<compile_context>
chip_gen: v7x
topology: tpu7x:2x2x1
jax: 0.10.0
libtpu: 0.0.40
codegen_flags: <defaults>
</compile_context>

<pallas_src>
import functools

import jax
import jax.numpy as jnp
from jax import lax
from jax.experimental import pallas as pl
from jax.experimental.pallas import tpu as pltpu

_MIB = 1024 * 1024


# ---------------------------------------------------------------------------
# Chip-aware budgets
# ---------------------------------------------------------------------------
def _chip_vmem_capacity_bytes():
    try:
        return int(pltpu.get_tpu_info().vmem_capacity_bytes)
    except Exception:
        return 64 * _MIB            # conservative fallback (v7x-sized VMEM)


def _select_budgets():
    """Returns (streaming block target bytes, vmem_limit_bytes, fused f32 budget)."""
    cap = _chip_vmem_capacity_bytes()
    if cap >= 96 * _MIB:            # v5e / v6e: 128 MiB physical VMEM
        return 4 * _MIB, 64 * _MIB, 3 * _MIB
    return 3 * _MIB, 32 * _MIB, 3 * _MIB    # v7x: 64 MiB physical VMEM


# ---------------------------------------------------------------------------
# Fused single-pass kernel (whole tensor resident in VMEM)
# ---------------------------------------------------------------------------
def _fused_kernel(x_ref, minvar_ref, w_ref, b_ref,
                  out_ref, mean_ref, var_ref, *, inv_m, bessel, eps):
    """Stats + channel gate + normalize in one pass over a resident block.

    x_ref:  (N, C, S) input tile (native dtype)
    minvar/w/b refs: (C, 1) f32 per-channel vectors
    out_ref: (N, C, S); mean_ref/var_ref: (C, 1) f32 batch mean / selected var
    """
    xf = x_ref[...].astype(jnp.float32)                              # (N, C, S)
    # Mean first, then the *centered* second moment: avoids E[x^2]-mean^2
    # catastrophic cancellation (review correctness note).
    ch_sum = jnp.sum(jnp.sum(xf, axis=2, keepdims=True), axis=0)     # (C, 1)
    mean = ch_sum * inv_m
    d = xf - mean[None, :, :]
    var_b = jnp.sum(jnp.sum(d * d, axis=2, keepdims=True), axis=0) * inv_m
    var_u = var_b * bessel                                           # unbiased

    minvar = minvar_ref[...]                                         # (C, 1)
    use_batch = var_u > minvar                                       # channel gate
    inv = jnp.where(use_batch,
                    lax.rsqrt(var_b + eps),                          # EUP slot
                    lax.rsqrt(minvar + eps))
    scale = w_ref[...] * inv
    shift = b_ref[...] - mean * scale

    out_ref[...] = (xf * scale[None, :, :] + shift[None, :, :]).astype(out_ref.dtype)
    mean_ref[...] = mean
    var_ref[...] = jnp.where(use_batch, var_u, minvar)


# ---------------------------------------------------------------------------
# Streaming pass 1: per-(n,c)-row sum / sum-of-squares of shifted data
# ---------------------------------------------------------------------------
def _stats_kernel(x_ref, shift_ref, stat_ref):
    """x_ref: (R, ts); shift_ref: (R, 1); stat_ref: (2, R, 1) resident acc."""
    @pl.when(pl.program_id(1) == 0)
    def _init():
        stat_ref[...] = jnp.zeros_like(stat_ref)

    d = x_ref[...].astype(jnp.float32) - shift_ref[...]              # (R, ts)
    # Lane reduce keeps rows on sublanes (no relayout); merged accumulator.
    stat_ref[0] += jnp.sum(d, axis=1, keepdims=True)
    stat_ref[1] += jnp.sum(d * d, axis=1, keepdims=True)


# ---------------------------------------------------------------------------
# Streaming pass 2: out = x * scale[row] + shift[row]
# ---------------------------------------------------------------------------
def _normalize_kernel(x_ref, scale_ref, shift_ref, out_ref):
    xf = x_ref[...].astype(jnp.float32)                              # (R, ts)
    out_ref[...] = (xf * scale_ref[...] + shift_ref[...]).astype(out_ref.dtype)


# ---------------------------------------------------------------------------
# Tiling for the streaming (N*C, S) path — sized by NATIVE itemsize
# ---------------------------------------------------------------------------
def _choose_tiles_2d(NR, S, itemsize, target_bytes):
    """Pick (row_tile, lane_tile) for a (NR, S) array.

    lane_tile: multiple of 128 dividing S (capped at 8192 lanes), or full S.
    row_tile:  divisor of NR, multiple of 8 (sublane pack), near the per-chip
               block-byte target; falls back to the full extent (always legal).
    Also prefers >= 2 row tiles so pass 1 can shard across v7x's 2 TensorCores.
    """
    if S % 128 == 0:
        ts = min(S, 8192)
        while S % ts:
            ts -= 128
    else:
        ts = S                       # full extent satisfies the (8,128) rule

    budget = max(1, target_bytes // max(1, ts * itemsize))
    fitting = [d for d in range(8, NR + 1, 8) if NR % d == 0]
    in_budget = [d for d in fitting if d <= budget]
    if in_budget:
        R = max(in_budget)
    elif fitting:
        R = min(fitting)
    else:
        R = NR

    # Megacore: create at least two row tiles when possible (v7x 2 TCs).
    if NR // R < 2:
        smaller = [d for d in fitting if d < R]
        if smaller:
            R = max(smaller)
    return R, ts


# ---------------------------------------------------------------------------
# Public wrapper: training-mode forward of _PartialNorm
# ---------------------------------------------------------------------------
def partial_norm_train(x_nchw, weight, bias, running_mean, running_var, *,
                       eps=1e-5, momentum=0.1, var_thresh=0.0,
                       pretrain_var=None, force_streaming=False,
                       target_block_bytes=None):
    """Returns (output[N,C,H,W], new_running_mean[C], new_running_var[C]).

    `pretrain_var` is the running_var snapshot the module captures at its
    first training call (defaults to the current running_var).
    """
    N, C, H, W = x_nchw.shape
    S = H * W
    M = N * S
    bessel = M / (M - 1) if M > 1 else 1.0

    if pretrain_var is None:
        pretrain_var = running_var
    min_var = jnp.minimum(pretrain_var.astype(jnp.float32),
                          jnp.float32(var_thresh))                   # (C,)
    w = weight.astype(jnp.float32)
    b = bias.astype(jnp.float32)

    stream_target, vmem_limit, fused_budget = _select_budgets()
    if target_block_bytes is not None:
        stream_target = int(target_block_bytes)

    use_fused = (not force_streaming) and (N * C * S * 4 <= fused_budget)

    if use_fused:
        # ---- Single fused pass: HBM traffic = read + write only ----
        x3 = x_nchw.reshape(N, C, S)                                 # free view
        out3, mean_c1, var_sel_c1 = pl.pallas_call(
            functools.partial(_fused_kernel,
                              inv_m=1.0 / M, bessel=bessel, eps=eps),
            grid=(1,),
            in_specs=[pl.BlockSpec((N, C, S), lambda i: (0, 0, 0)),
                      pl.BlockSpec((C, 1), lambda i: (0, 0)),
                      pl.BlockSpec((C, 1), lambda i: (0, 0)),
                      pl.BlockSpec((C, 1), lambda i: (0, 0))],
            out_specs=(pl.BlockSpec((N, C, S), lambda i: (0, 0, 0)),
                       pl.BlockSpec((C, 1), lambda i: (0, 0)),
                       pl.BlockSpec((C, 1), lambda i: (0, 0))),
            out_shape=(jax.ShapeDtypeStruct((N, C, S), x_nchw.dtype),
                       jax.ShapeDtypeStruct((C, 1), jnp.float32),
                       jax.ShapeDtypeStruct((C, 1), jnp.float32)),
            compiler_params=pltpu.CompilerParams(
                dimension_semantics=("arbitrary",),
                vmem_limit_bytes=vmem_limit),
        )(x3, min_var.reshape(C, 1), w.reshape(C, 1), b.reshape(C, 1))
        out = out3.reshape(N, C, H, W)
        mean = mean_c1.reshape(C)
        var_sel = var_sel_c1.reshape(C)
    else:
        # ---- Streaming 2-pass path on the fully-packed (N*C, S) view ----
        NR = N * C
        x2 = x_nchw.reshape(NR, S)                                   # free view
        itemsize = jnp.dtype(x_nchw.dtype).itemsize
        R, ts = _choose_tiles_2d(NR, S, itemsize, stream_target)
        grid = (NR // R, S // ts)

        # Per-row numerical shift (running_mean) reduces E[x^2]-mean^2
        # cancellation; the result is independent of the shift's value.
        c_shift = running_mean.astype(jnp.float32)                   # (C,)
        shift_rows = jnp.tile(c_shift, N).reshape(NR, 1)

        row_stats = pl.pallas_call(
            _stats_kernel,
            grid=grid,
            in_specs=[pl.BlockSpec((R, ts), lambda i, j: (i, j)),
                      pl.BlockSpec((R, 1), lambda i, j: (i, 0))],
            out_specs=pl.BlockSpec((2, R, 1), lambda i, j: (0, i, 0)),
            out_shape=jax.ShapeDtypeStruct((2, NR, 1), jnp.float32),
            compiler_params=pltpu.CompilerParams(
                dimension_semantics=("parallel", "arbitrary"),
                vmem_limit_bytes=vmem_limit),
        )(x2, shift_rows)

        # ---- Tiny O(C) per-channel math in plain JAX ----
        s1 = row_stats[0, :, 0].reshape(N, C).sum(axis=0)            # (C,)
        s2 = row_stats[1, :, 0].reshape(N, C).sum(axis=0)            # (C,)
        mean = c_shift + s1 / M
        var_b = jnp.maximum(s2 / M - (s1 / M) ** 2, 0.0)             # biased
        var_u = var_b * bessel                                       # unbiased
        use_batch = var_u > min_var
        inv = jnp.where(use_batch, lax.rsqrt(var_b + eps),
                        lax.rsqrt(min_var + eps))
        scale = w * inv
        shift = b - mean * scale
        var_sel = jnp.where(use_batch, var_u, min_var)

        scale_rows = jnp.tile(scale, N).reshape(NR, 1)
        shift_rows2 = jnp.tile(shift, N).reshape(NR, 1)

        out2 = pl.pallas_call(
            _normalize_kernel,
            grid=grid,
            in_specs=[pl.BlockSpec((R, ts), lambda i, j: (i, j)),
                      pl.BlockSpec((R, 1), lambda i, j: (i, 0)),
                      pl.BlockSpec((R, 1), lambda i, j: (i, 0))],
            out_specs=pl.BlockSpec((R, ts), lambda i, j: (i, j)),
            out_shape=jax.ShapeDtypeStruct((NR, S), x_nchw.dtype),
            compiler_params=pltpu.CompilerParams(
                dimension_semantics=("parallel", "parallel"),
                vmem_limit_bytes=vmem_limit),
        )(x2, scale_rows, shift_rows2)
        out = out2.reshape(N, C, H, W)

    # Running-stat buffer updates (PyTorch module side effects) -> new arrays.
    new_rm = (1.0 - momentum) * running_mean + momentum * mean
    new_rv = (1.0 - momentum) * running_var + momentum * var_sel
    return out, new_rm, new_rv


# ---------------------------------------------------------------------------
# Pure-JAX reference mirroring the PyTorch training forward
# ---------------------------------------------------------------------------
def _reference(x, weight, bias, running_mean, running_var,
               *, eps, momentum, var_thresh):
    xf = x.astype(jnp.float32)
    N, C, H, W = x.shape
    n = N * H * W
    red = (0, 2, 3)
    mu = jnp.mean(xf, axis=red, keepdims=True)                       # (1,C,1,1)
    var_b = jnp.mean((xf - mu) ** 2, axis=red, keepdims=True)
    var_u = var_b * (n / (n - 1)) if n > 1 else var_b
    min_var = jnp.minimum(running_var, var_thresh).reshape(1, C, 1, 1)
    w = weight.reshape(1, C, 1, 1)
    b = bias.reshape(1, C, 1, 1)
    out_batch = (xf - mu) / jnp.sqrt(var_b + eps) * w + b
    out_pre = (xf - mu) / jnp.sqrt(min_var + eps) * w + b
    use = (var_u > min_var).astype(jnp.float32)
    out = out_batch * use + out_pre * (1.0 - use)
    var_sel = var_u * use + min_var * (1.0 - use)
    new_rm = (1.0 - momentum) * running_mean + momentum * mu.reshape(C)
    new_rv = (1.0 - momentum) * running_var + momentum * var_sel.reshape(C)
    return out.astype(x.dtype), new_rm, new_rv


if __name__ == "__main__":
    eps = 1e-5
    momentum = 0.1
    var_thresh = 2.0    # nonzero so both branches of the channel gate are hit

    key = jax.random.PRNGKey(0)

    # Cases: two fused-path shapes (the module's typical small NCHW usage),
    # one forced-streaming case with tiny blocks (multi row-tile grid, tiled
    # scale/shift), and one forced-streaming case whose spatial extent forces
    # multi-step accumulation over the lane-tile axis (pl.when init path).
    cases = [
        dict(shape=(2, 4, 16, 16), force_streaming=False, target=None),
        dict(shape=(2, 8, 48, 48), force_streaming=False, target=None),
        dict(shape=(4, 8, 48, 48), force_streaming=True, target=64 * 1024),
        dict(shape=(2, 8, 96, 96), force_streaming=True, target=None),
    ]

    for case in cases:
        shape = case["shape"]
        B, C, H, W = shape
        key, kx, kw = jax.random.split(key, 3)
        x = jax.random.normal(kx, shape, dtype=jnp.float32)

        # reset_parameters(): weight ~ U[0,1), bias = 0,
        # running_mean = 0, running_var = 1.
        weight = jax.random.uniform(kw, (C,), dtype=jnp.float32)
        bias = jnp.zeros((C,), dtype=jnp.float32)
        running_mean = jnp.zeros((C,), dtype=jnp.float32)
        running_var = jnp.ones((C,), dtype=jnp.float32)

        out, new_rm, new_rv = partial_norm_train(
            x, weight, bias, running_mean, running_var,
            eps=eps, momentum=momentum, var_thresh=var_thresh,
            force_streaming=case["force_streaming"],
            target_block_bytes=case["target"])
        jax.block_until_ready((out, new_rm, new_rv))

        ref_out, ref_rm, ref_rv = _reference(
            x, weight, bias, running_mean, running_var,
            eps=eps, momentum=momentum, var_thresh=var_thresh)

        assert out.shape == shape
        assert jnp.allclose(out, ref_out, atol=1e-4, rtol=1e-4), \
            f"output mismatch for {shape} (streaming={case['force_streaming']})"
        assert jnp.allclose(new_rm, ref_rm, atol=1e-5, rtol=1e-5), \
            f"running_mean mismatch for {shape}"
        assert jnp.allclose(new_rv, ref_rv, atol=1e-4, rtol=1e-4), \
            f"running_var mismatch for {shape}"

    print("KERNEL_OK")
</pallas_src>

<mosaic_0001>
module attributes {stable_mosaic.version = 11 : i64} {
  func.func @_fused_kernel(%arg0: i32, %arg1: memref<2x4x256xf32, #tpu.memory_space<vmem>>, %arg2: memref<4x1xf32, #tpu.memory_space<vmem>>, %arg3: memref<4x1xf32, #tpu.memory_space<vmem>>, %arg4: memref<4x1xf32, #tpu.memory_space<vmem>>, %arg5: memref<2x4x256xf32, #tpu.memory_space<vmem>>, %arg6: memref<4x1xf32, #tpu.memory_space<vmem>>, %arg7: memref<4x1xf32, #tpu.memory_space<vmem>>) attributes {dimension_semantics = [#tpu.dimension_semantics<arbitrary>], iteration_bounds = array<i64: 1>, scalar_prefetch = 0 : i64, scratch_operands = 0 : i64, tpu.core_type = #tpu.core_type<tc>, window_params = [{pipeline_mode = #tpu.pipeline_mode<synchronous>, transform_indices = @transform_0, window_bounds = array<i64: 2, 4, 256>}, {pipeline_mode = #tpu.pipeline_mode<synchronous>, transform_indices = @transform_1, window_bounds = array<i64: 4, 1>}, {pipeline_mode = #tpu.pipeline_mode<synchronous>, transform_indices = @transform_2, window_bounds = array<i64: 4, 1>}, {pipeline_mode = #tpu.pipeline_mode<synchronous>, transform_indices = @transform_3, window_bounds = array<i64: 4, 1>}, {pipeline_mode = #tpu.pipeline_mode<synchronous>, transform_indices = @transform_4, window_bounds = array<i64: 2, 4, 256>}, {pipeline_mode = #tpu.pipeline_mode<synchronous>, transform_indices = @transform_5, window_bounds = array<i64: 4, 1>}, {pipeline_mode = #tpu.pipeline_mode<synchronous>, transform_indices = @transform_6, window_bounds = array<i64: 4, 1>}]} {
    %c0 = arith.constant 0 : index
    %c0_0 = arith.constant 0 : index
    %c0_1 = arith.constant 0 : index
    %0 = vector.load %arg1[%c0, %c0_0, %c0_1] : memref<2x4x256xf32, #tpu.memory_space<vmem>>, vector<2x4x256xf32>
    %cst = arith.constant dense<0.000000e+00> : vector<2x4xf32>
    %1 = vector.multi_reduction <add>, %0, %cst [2] : vector<2x4x256xf32> to vector<2x4xf32>
    %2 = vector.shape_cast %1 : vector<2x4xf32> to vector<2x4x1xf32>
    %cst_2 = arith.constant dense<0.000000e+00> : vector<4x1xf32>
    %3 = vector.multi_reduction <add>, %2, %cst_2 [0] : vector<2x4x1xf32> to vector<4x1xf32>
    %cst_3 = arith.constant 0.001953125 : f32
    %4 = vector.broadcast %cst_3 : f32 to vector<4x1xf32>
    %5 = arith.mulf %3, %4 : vector<4x1xf32>
    %6 = vector.shape_cast %5 : vector<4x1xf32> to vector<1x4x1xf32>
    %7 = vector.broadcast %6 : vector<1x4x1xf32> to vector<2x4x256xf32>
    %8 = arith.subf %0, %7 : vector<2x4x256xf32>
    %9 = arith.mulf %8, %8 : vector<2x4x256xf32>
    %cst_4 = arith.constant dense<0.000000e+00> : vector<2x4xf32>
    %10 = vector.multi_reduction <add>, %9, %cst_4 [2] : vector<2x4x256xf32> to vector<2x4xf32>
    %11 = vector.shape_cast %10 : vector<2x4xf32> to vector<2x4x1xf32>
    %cst_5 = arith.constant dense<0.000000e+00> : vector<4x1xf32>
    %12 = vector.multi_reduction <add>, %11, %cst_5 [0] : vector<2x4x1xf32> to vector<4x1xf32>
    %cst_6 = arith.constant 0.001953125 : f32
    %13 = vector.broadcast %cst_6 : f32 to vector<4x1xf32>
    %14 = arith.mulf %12, %13 : vector<4x1xf32>
    %cst_7 = arith.constant 1.00195694 : f32
    %15 = vector.broadcast %cst_7 : f32 to vector<4x1xf32>
    %16 = arith.mulf %14, %15 : vector<4x1xf32>
    %c0_8 = arith.constant 0 : index
    %c0_9 = arith.constant 0 : index
    %17 = vector.load %arg2[%c0_8, %c0_9] : memref<4x1xf32, #tpu.memory_space<vmem>>, vector<4x1xf32>
    %18 = arith.cmpf ogt, %16, %17 : vector<4x1xf32>
    %cst_10 = arith.constant 9.99999974E-6 : f32
    %19 = vector.broadcast %cst_10 : f32 to vector<4x1xf32>
    %20 = arith.addf %14, %19 : vector<4x1xf32>
    %21 = math.rsqrt %20 : vector<4x1xf32>
    %cst_11 = arith.constant 9.99999974E-6 : f32
    %22 = vector.broadcast %cst_11 : f32 to vector<4x1xf32>
    %23 = arith.addf %17, %22 : vector<4x1xf32>
    %24 = math.rsqrt %23 : vector<4x1xf32>
    %25 = arith.select %18, %21, %24 : vector<4x1xi1>, vector<4x1xf32>
    %c0_12 = arith.constant 0 : index
    %c0_13 = arith.constant 0 : index
    %26 = vector.load %arg3[%c0_12, %c0_13] : memref<4x1xf32, #tpu.memory_space<vmem>>, vector<4x1xf32>
    %27 = arith.mulf %26, %25 : vector<4x1xf32>
    %c0_14 = arith.constant 0 : index
    %c0_15 = arith.constant 0 : index
    %28 = vector.load %arg4[%c0_14, %c0_15] : memref<4x1xf32, #tpu.memory_space<vmem>>, vector<4x1xf32>
    %29 = arith.mulf %5, %27 : vector<4x1xf32>
    %30 = arith.subf %28, %29 : vector<4x1xf32>
    %31 = vector.shape_cast %27 : vector<4x1xf32> to vector<1x4x1xf32>
    %32 = vector.broadcast %31 : vector<1x4x1xf32> to vector<2x4x256xf32>
    %33 = arith.mulf %0, %32 : vector<2x4x256xf32>
    %34 = vector.shape_cast %30 : vector<4x1xf32> to vector<1x4x1xf32>
    %35 = vector.broadcast %34 : vector<1x4x1xf32> to vector<2x4x256xf32>
    %36 = arith.addf %33, %35 : vector<2x4x256xf32>
    %c0_16 = arith.constant 0 : index
    %c0_17 = arith.constant 0 : index
    %c0_18 = arith.constant 0 : index
    %37 = vector.load %arg5[%c0_16, %c0_17, %c0_18] : memref<2x4x256xf32, #tpu.memory_space<vmem>>, vector<2x4x256xf32>
    tpu.vector_store %arg5[%c0_16, %c0_17, %c0_18], %36 {strides = array<i32>} : memref<2x4x256xf32, #tpu.memory_space<vmem>>, vector<2x4x256xf32>,
    %c0_19 = arith.constant 0 : index
    %c0_20 = arith.constant 0 : index
    %38 = vector.load %arg6[%c0_19, %c0_20] : memref<4x1xf32, #tpu.memory_space<vmem>>, vector<4x1xf32>
    tpu.vector_store %arg6[%c0_19, %c0_20], %5 {strides = array<i32>} : memref<4x1xf32, #tpu.memory_space<vmem>>, vector<4x1xf32>,
    %39 = arith.select %18, %16, %17 : vector<4x1xi1>, vector<4x1xf32>
    %c0_21 = arith.constant 0 : index
    %c0_22 = arith.constant 0 : index
    %40 = vector.load %arg7[%c0_21, %c0_22] : memref<4x1xf32, #tpu.memory_space<vmem>>, vector<4x1xf32>
    tpu.vector_store %arg7[%c0_21, %c0_22], %39 {strides = array<i32>} : memref<4x1xf32, #tpu.memory_space<vmem>>, vector<4x1xf32>,
    return
  }
  func.func @transform_0(%arg0: i32) -> (i32, i32, i32) {
    %c0_i32 = arith.constant 0 : i32
    %c0_i32_0 = arith.constant 0 : i32
    %c0_i32_1 = arith.constant 0 : i32
    %c0_i32_2 = arith.constant 0 : i32
    return %c0_i32, %c0_i32_0, %c0_i32_1 : i32, i32, i32
  }
  func.func @transform_1(%arg0: i32) -> (i32, i32) {
    %c0_i32 = arith.constant 0 : i32
    %c0_i32_0 = arith.constant 0 : i32
    %c0_i32_1 = arith.constant 0 : i32
    return %c0_i32, %c0_i32_0 : i32, i32
  }
  func.func @transform_2(%arg0: i32) -> (i32, i32) {
    %c0_i32 = arith.constant 0 : i32
    %c0_i32_0 = arith.constant 0 : i32
    %c0_i32_1 = arith.constant 0 : i32
    return %c0_i32, %c0_i32_0 : i32, i32
  }
  func.func @transform_3(%arg0: i32) -> (i32, i32) {
    %c0_i32 = arith.constant 0 : i32
    %c0_i32_0 = arith.constant 0 : i32
    %c0_i32_1 = arith.constant 0 : i32
    return %c0_i32, %c0_i32_0 : i32, i32
  }
  func.func @transform_4(%arg0: i32) -> (i32, i32, i32) {
    %c0_i32 = arith.constant 0 : i32
    %c0_i32_0 = arith.constant 0 : i32
    %c0_i32_1 = arith.constant 0 : i32
    %c0_i32_2 = arith.constant 0 : i32
    return %c0_i32, %c0_i32_0, %c0_i32_1 : i32, i32, i32
  }
  func.func @transform_5(%arg0: i32) -> (i32, i32) {
    %c0_i32 = arith.constant 0 : i32
    %c0_i32_0 = arith.constant 0 : i32
    %c0_i32_1 = arith.constant 0 : i32
    return %c0_i32, %c0_i32_0 : i32, i32
  }
  func.func @transform_6(%arg0: i32) -> (i32, i32) {
    %c0_i32 = arith.constant 0 : i32
    %c0_i32_0 = arith.constant 0 : i32
    %c0_i32_1 = arith.constant 0 : i32
    return %c0_i32, %c0_i32_0 : i32, i32
  }
}

</mosaic_0001>

<bundles_post_ra>
// kernel: tpu_custom_call.1
= control target key start
LH: loop header
LB: loop body
LE: loop exit
PB: predicated region body
PF: predicated region fallthrough
CT: control target
= control target key end

     0   :  { %12 = vsyncpa [#allocation3], 0  ;;  %s339_s0 = inlined_call_operand.hbm [shape: f32[2,4,256], index: 0, kind: input, shape index: {}]   ;;  %s340_s1 = inlined_call_operand.vmem [shape: f32[4,1], index: 1, kind: input, shape index: {}]   ;;  %s341_s2 = inlined_call_operand.vmem [shape: f32[4,1], index: 2, kind: input, shape index: {}]   ;;  %s342_s3 = inlined_call_operand.vmem [shape: f32[4,1], index: 3, kind: input, shape index: {}]   ;;  %s343_s4 = inlined_call_operand.hbm [shape: f32[2,4,256], index: 4, kind: output, shape index: {0}]   ;;  %s344_s5 = inlined_call_operand.vmem [shape: f32[4,1], index: 5, kind: output, shape index: {1}]   ;;  %s345_s6 = inlined_call_operand.vmem [shape: f32[4,1], index: 6, kind: output, shape index: {2}]  }
   0x1   :  { %13 = vsyncpa [#allocation4], 0  ;;  %s225_s21 = smov [#allocation2]   ;;  %s177_s25 = scalar_lea.hbm %s339_s0, 256 }
   0x2   :  { %s19_s22 = sshll.u32 %s225_s21, 4  ;;  %p178_p0 = scmp.ne.s32.totalorder %s339_s0, %s177_s25  ;;  %s20_s22 = int_to_ptr.vmem [resolvable:$true] %s19_s22 }
   0x3   :  { %p181_p1 = scmp.lt.u32.totalorder %s177_s25, %s339_s0 }
   0x5   :  { %p183_p2 = pnand %p181_p1, %p178_p0 }
   0x7   :  { %186 = shalt.err (!%p183_p2)
}
   0x8   :  { %s187_s30 = scalar_lea.vmem %s20_s22, 256  ;;  %p192_p4 = scmp.lt.s32.totalorder %s20_s22, %s20_s22 }
   0x9   :  { %p188_p3 = scmp.ne.s32.totalorder %s20_s22, %s187_s30  ;;  %p193_p5 = scmp.lt.s32.totalorder %s187_s30, %s187_s30 }
   0xb   :  { %p194_p6 = por %p193_p5, %p192_p4 }
   0xd   :  { %p195_p7 = pnand %p194_p6, %p188_p3 }
   0xf   :  { %198 = shalt.err (!%p195_p7)
}
  0x10   :  { %s226_s7 = smov 128   ;;  %s227_s8 = smov 8  }
  0x11   :  { %25 = dma.hbm_to_vmem [thread:$0]  %s339_s0, 256, %s20_s22, [#allocation3], %s226_s7, %s226_s7, %s227_s8  }
  0x12   :  { %221 = dma.done.wait [#allocation3], 256  }
  0x13   :  { %222 = vsyncadd [#allocation3], 4294967040  ;;  %vm43_vm0 = vcmask 1043456   ;;  %v281_v0 = vld [vmem:[#allocation2] sm:$0xff]  ;;  %v283_v1 = vld [vmem:[#allocation2 + $0x8] sm:$0xff]  ;;  %v62_v12 = vlaneseq  ;;  %vm134_vm1 = vcmask 3072  }
  0x14   :  { %v39_v2 = vcombine.high %v281_v0, %v281_v0  ;;  %v44_v3 = vsel %vm43_vm0, %v281_v0, 0.0  ;;  %v40_v4 = vcombine.high %v283_v1, %v283_v1  ;;  %v49_v6 = vsel %vm43_vm0, %v283_v1, 0.0  ;;  %v92_v37 = vld [vmem:[%s340_s1] sm:$0xf] }
  0x15   :  { %v228_v10 = vmov 839922192   ;;  %v63_v15 = vshrl.u32 %v62_v12, 7  ;;  %v229_v35 = vmov 0   ;;  %v96_v41 = vadd.f32 1e-05, %v92_v37 }
  0x16   :  { %v45_v5 = vsel %vm43_vm0, %v39_v2, 0.0  ;;  %v50_v7 = vsel %vm43_vm0, %v40_v4, 0.0  ;;  %v60_v11 = vunpack.c.l.s4 %v228_v10  ;;  %169 = vset.pattern.permute.xlu0 %v229_v35  ;;  %170 = vset.pattern.permute.xlu1 %v229_v35  ;;  %v99_v48 = vld [vmem:[%s341_s2] sm:$0xf] }
  0x17   :  { %v46_v8 = vadd.f32 %v45_v5, %v44_v3  ;;  %v51_v9 = vadd.f32 %v50_v7, %v49_v6  ;;  %173 = vrsqrt.f32 %v96_v41  ;;  %v101_v52 = vld [vmem:[%s342_s3] sm:$0xf] }
  0x18   :  { %v61_v14 = vunpack.c.0.s8 %v60_v11 }
  0x19   :  { %47 = vadd.xlane.f32.xlu0 %v46_v8 }
  0x1a   :  { %v64_v20 = vsub.s32 %v61_v14, %v63_v15 }
  0x1d   :  { %52 = vadd.xlane.f32.xlu0 %v51_v9 }
  0x21   :  { %v174_v47 = vpop.eup %173 }
  0xa6   :  { %v48_v13 = vpop.xlane.xlu0 %47 }
  0xa7   :  { %v54_v17 = vsel %vm43_vm0, %v48_v13, 0.0 }
  0xaa   :  { %v53_v16 = vpop.xlane.xlu0 %52 }
  0xab   :  { %v55_v18 = vsel %vm43_vm0, %v53_v16, 0.0 }
  0xac   :  { %v56_v19 = vadd.f32 %v55_v18, %v54_v17 }
  0xae   :  { %v57_v21 = vmul.f32 0.001953125, %v56_v19 }
  0xb0   :  { %135 = vst.msk [vmem:[%s344_s5] sm:$0xf] %vm134_vm1, %v57_v21  ;;  %v65_v22 = vrot.slane %v57_v21, %v64_v20 }
  0xb2   :  { %v67_v23 = vsub.f32 %v281_v0, %v65_v22  ;;  %v68_v24 = vsub.f32 %v283_v1, %v65_v22 }
  0xb4   :  { %v69_v25 = vmul.f32 %v67_v23, %v67_v23  ;;  %v70_v26 = vmul.f32 %v68_v24, %v68_v24 }
  0xb6   :  { %v73_v27 = vcombine.high %v69_v25, %v69_v25  ;;  %v74_v28 = vcombine.high %v70_v26, %v70_v26  ;;  %v77_v29 = vsel %vm43_vm0, %v69_v25, 0.0  ;;  %v82_v33 = vsel %vm43_vm0, %v70_v26, 0.0 }
  0xb8   :  { %v78_v30 = vsel %vm43_vm0, %v73_v27, 0.0  ;;  %v83_v32 = vsel %vm43_vm0, %v74_v28, 0.0 }
  0xb9   :  { %v79_v31 = vadd.f32 %v78_v30, %v77_v29  ;;  %v84_v34 = vadd.f32 %v83_v32, %v82_v33 }
  0xbb   :  { %80 = vadd.xlane.f32.xlu1 %v79_v31 }
  0xbf   :  { %85 = vadd.xlane.f32.xlu1 %v84_v34 }
 0x148   :  { %v81_v36 = vpop.xlane.xlu1 %80 }
 0x149   :  { %v87_v39 = vsel %vm43_vm0, %v81_v36, 0.0 }
 0x14c   :  { %v86_v38 = vpop.xlane.xlu1 %85 }
 0x14d   :  { %v88_v40 = vsel %vm43_vm0, %v86_v38, 0.0 }
 0x14e   :  { %v89_v42 = vadd.f32 %v88_v40, %v87_v39 }
 0x150   :  { %v90_v43 = vmul.f32 0.001953125, %v89_v42 }
 0x152   :  { %v91_v44 = vmul.f32 1.0019569, %v90_v43  ;;  %v94_v45 = vadd.f32 1e-05, %v90_v43 }
 0x154   :  { %vm93_vm2 = vcmp.gt.f32.partialorder %v91_v44, %v92_v37  ;;  %175 = vrsqrt.f32 %v94_v45 }
 0x155   :  { %v136_v46 = vsel %vm93_vm2, %v91_v44, %v92_v37 }
 0x156   :  { %137 = vst.msk [vmem:[%s345_s6] sm:$0xf] %vm134_vm1, %v136_v46  ;;  %s230_s6 = smov [#allocation5]  }
 0x157   :  { %s143_s18 = sshll.u32 %s230_s6, 4  ;;  %s144_s18 = int_to_ptr.vmem [resolvable:$true] %s143_s18 }
 0x158   :  { %s199_s2 = scalar_lea.vmem %s144_s18, 256  ;;  %p204_p9 = scmp.lt.s32.totalorder %s144_s18, %s144_s18 }
 0x159   :  { %p200_p8 = scmp.ne.s32.totalorder %s144_s18, %s199_s2  ;;  %p205_p10 = scmp.lt.s32.totalorder %s199_s2, %s199_s2 }
 0x15b   :  { %p206_p11 = por %p205_p10, %p204_p9 }
 0x15d   :  { %p207_p12 = pnand %p206_p11, %p200_p8 }
 0x15e   :  { %v176_v49 = vpop.eup %175 }
 0x15f   :  { %v98_v50 = vsel %vm93_vm2, %v176_v49, %v174_v47 }
 0x160   :  { %v100_v51 = vmul.f32 %v99_v48, %v98_v50 }
 0x162   :  { %106 = vperm.xlu0 %169, %v100_v51   ;;  %v102_v53 = vmul.f32 %v100_v51, %v57_v21 }
 0x164   :  { %v103_v54 = vsub.f32 %v101_v52, %v102_v53 }
 0x166   :  { %120 = vperm.xlu1 %170, %v103_v54  }
 0x1e1   :  { %v107_v55 = vpop.permute.xlu0 %106 }
 0x1e2   :  { %v114_v56 = vrot.slane %v107_v55, %v64_v20 }
 0x1e4   :  { %v116_v58 = vmul.f32 %v114_v56, %v281_v0  ;;  %v117_v59 = vmul.f32 %v114_v56, %v283_v1 }
 0x1e5   :  { %v121_v57 = vpop.permute.xlu1 %120 }
 0x1e6   :  { %v128_v60 = vrot.slane %v121_v57, %v64_v20 }
 0x1e8   :  { %v130_v61 = vadd.f32 %v128_v60, %v116_v58  ;;  %v131_v62 = vadd.f32 %v128_v60, %v117_v59 }
 0x1ea   :  { %132 = vst [vmem:[#allocation5] sm:$0xff] %v130_v61  ;;  %133 = vst [vmem:[#allocation5 + $0x8] sm:$0xff] %v131_v62 }
 0x1eb   :  { %210 = shalt.err (!%p207_p12)
}
 0x1ec   :  { %s211_s20 = scalar_lea.hbm %s343_s4, 256 }
 0x1ed   :  { %p212_p13 = scmp.ne.s32.totalorder %s343_s4, %s211_s20  ;;  %p215_p0 = scmp.lt.u32.totalorder %s211_s20, %s343_s4 }
 0x1ef   :  { %p217_p1 = pnand %p215_p0, %p212_p13 }
 0x1f1   :  { %220 = shalt.err (!%p217_p1)
}
 0x1f2   :  { %149 = dma.vmem_to_hbm [thread:$0]  %s144_s18, 256, %s343_s4, [#allocation4], %s226_s7, %s226_s7, %s227_s8  }
 0x1f3   :  { %223 = dma.done.wait [#allocation4], 256  }
 0x1f4   :  { %224 = vsyncadd [#allocation4], 4294967040 }
 0x1f5   :  { %161 = vsyncpa [#allocation3], 1 }
 0x1f6   :  { %162 = vsyncpa [#allocation4], 1 }

</bundles_post_ra>
